<compile_context>
chip_gen: v5e
topology: v5e:2x2
jax: 0.10.0
libtpu: 0.0.40
codegen_flags: <defaults>
</compile_context>

<pallas_src>
import math

import jax
import jax.numpy as jnp
from jax.experimental import pallas as pl
from jax.experimental.pallas import tpu as pltpu

LANE = 128


def _gelu_exact(x):
    # PyTorch nn.GELU() default: 0.5 * x * (1 + erf(x / sqrt(2)))
    return 0.5 * x * (1.0 + jax.lax.erf(x * (1.0 / math.sqrt(2.0))))


def fused_forward_kernel(
    # activations
    hs_ref, x_ref,
    # adapter: Linear (weight pre-scaled by 1/S) -> GELU -> LayerNorm
    wa_ref, ba_ref, lng_ref, lnb_ref,
    # folded attention + bidirectional-LSTM gate projection: (H, 8H), (1, 8H)
    wg_ref, bg_ref,
    # net layer 1 split: x-part, lstm-fwd-part, lstm-rev-part
    w1x_ref, w1f_ref, w1r_ref, b1_ref, g1_ref, be1_ref,
    # net layer 2
    w2_ref, b2_ref, g2_ref, be2_ref,
    # net layer 3 (padded to LANE output columns)
    w3_ref, b3_ref,
    # lm_head split into fwd / rev halves
    wlmf_ref, wlmr_ref, blm_ref,
    # outputs
    logits_ref, lm_ref,
):
    f32 = jnp.float32

    # ---- context = last_hidden_state.mean(dim=1); 1/S folded into wa ------
    ctx = jnp.sum(hs_ref[...], axis=1)                       # (B, D_t)

    # ---- adapter: Linear -> GELU -> LayerNorm ------------------------------
    h = jnp.dot(ctx, wa_ref[...], preferred_element_type=f32) + ba_ref[...]
    h = _gelu_exact(h)
    mu = jnp.mean(h, axis=-1, keepdims=True)
    var = jnp.mean((h - mu) ** 2, axis=-1, keepdims=True)
    h = (h - mu) * jax.lax.rsqrt(var + 1e-5) * lng_ref[...] + lnb_ref[...]

    # ---- attention (seq_len==1 -> identity softmax) folded with LSTM gates --
    # One fused lane-dense gate matmul: (B, 8H). Layout: [fwd 4H | rev 4H],
    # each direction ordered [i, f, g, o] (PyTorch gate order).
    gates = jnp.dot(h, wg_ref[...], preferred_element_type=f32) + bg_ref[...]
    H = gates.shape[-1] // 8

    def lstm_out(g4):                                        # g4: (B, 4H)
        i = jax.nn.sigmoid(g4[:, 0 * H:1 * H])
        # forget gate multiplies c0 == 0 -> exactly zero contribution
        g = jnp.tanh(g4[:, 2 * H:3 * H])
        o = jax.nn.sigmoid(g4[:, 3 * H:4 * H])
        return o * jnp.tanh(i * g)                           # c = i*g

    h_fwd = lstm_out(gates[:, :4 * H])                       # (B, H)
    h_rev = lstm_out(gates[:, 4 * H:])                       # (B, H)

    # ---- self.net on concat([x, h_fwd, h_rev]) via split matmuls ----------
    def batchnorm_train(y, gamma, beta):
        m = jnp.mean(y, axis=0, keepdims=True)
        bvar = jnp.mean((y - m) ** 2, axis=0, keepdims=True)  # biased var
        return (y - m) * jax.lax.rsqrt(bvar + 1e-5) * gamma + beta

    y = (jnp.dot(x_ref[...], w1x_ref[...], preferred_element_type=f32)
         + jnp.dot(h_fwd, w1f_ref[...], preferred_element_type=f32)
         + jnp.dot(h_rev, w1r_ref[...], preferred_element_type=f32)
         + b1_ref[...])
    y = _gelu_exact(batchnorm_train(y, g1_ref[...], be1_ref[...]))
    # Dropout -> identity (see TODO at top)
    y = jnp.dot(y, w2_ref[...], preferred_element_type=f32) + b2_ref[...]
    y = _gelu_exact(batchnorm_train(y, g2_ref[...], be2_ref[...]))
    # logits padded to LANE output columns -> unmasked lane-dense store
    logits_ref[...] = jnp.dot(y, w3_ref[...], preferred_element_type=f32) + b3_ref[...]

    # ---- lm_head(concat([h_fwd, h_rev])) via split matmuls ------------------
    # TODO(synk): reference code has a shape bug (Linear(hidden, vocab) applied
    # to a 2*hidden tensor would raise in torch); here lm_head takes 2*hidden
    # features so the op is well defined.
    lm_ref[...] = (jnp.dot(h_fwd, wlmf_ref[...], preferred_element_type=f32)
                   + jnp.dot(h_rev, wlmr_ref[...], preferred_element_type=f32)
                   + blm_ref[...])


def enhanced_forward(x, hidden_states, params):
    B, input_size = x.shape
    S = hidden_states.shape[1]
    H = params["wa"].shape[1]
    num_classes = params["w3"].shape[1]
    vocab = params["wlm"].shape[1]

    # ---------------- host-side weight folding (exact up to f32 rounding) ---
    wa_s = params["wa"] * (1.0 / S)                              # fold mean(1/S)
    w_attn = params["wv"] @ params["wo"]                         # fold V->out_proj
    b_attn = params["bv"] @ params["wo"] + params["bo"]
    w_lstm = jnp.concatenate([params["wih_f"], params["wih_r"]], axis=1)  # (H, 8H)
    b_lstm = jnp.concatenate([params["b_f"], params["b_r"]], axis=1)      # (1, 8H)
    # fold attention projection straight into the LSTM gate projection
    w_gate = w_attn @ w_lstm                                     # (H, 8H)
    b_gate = b_attn @ w_lstm + b_lstm                            # (1, 8H)
    w1 = params["w1"]
    w1_x = w1[:input_size]                                       # (in, H)
    w1_f = w1[input_size:input_size + H]                         # (H, H)
    w1_r = w1[input_size + H:]                                   # (H, H)
    wlm_f = params["wlm"][:H]                                    # (H, vocab)
    wlm_r = params["wlm"][H:]                                    # (H, vocab)
    # pad the tiny classifier head to a full 128-lane output width
    nc_pad = max(LANE, ((num_classes + LANE - 1) // LANE) * LANE)
    w3_p = jnp.zeros((H, nc_pad), jnp.float32).at[:, :num_classes].set(params["w3"])
    b3_p = jnp.zeros((1, nc_pad), jnp.float32).at[:, :num_classes].set(params["b3"])

    args = (
        hidden_states, x,
        wa_s, params["ba"], params["ln_g"], params["ln_b"],
        w_gate, b_gate,
        w1_x, w1_f, w1_r, params["b1"], params["g1"], params["be1"],
        params["w2"], params["b2"], params["g2"], params["be2"],
        w3_p, b3_p,
        wlm_f, wlm_r, params["blm"],
    )
    vmem = pl.BlockSpec(memory_space=pltpu.MemorySpace.VMEM)
    logits_pad, lm = pl.pallas_call(
        fused_forward_kernel,
        out_shape=(
            jax.ShapeDtypeStruct((B, nc_pad), jnp.float32),
            jax.ShapeDtypeStruct((B, vocab), jnp.float32),
        ),
        in_specs=[vmem] * len(args),
        out_specs=(vmem, vmem),
    )(*args)
    return logits_pad[:, :num_classes], lm


def init_params(key, input_size, hidden, d_t, num_classes, vocab):
    ks = jax.random.split(key, 16)

    def nrm(k, shape, scale=0.05):
        return scale * jax.random.normal(k, shape, jnp.float32)

    H = hidden
    p = {}
    # adapter
    p["wa"] = nrm(ks[0], (d_t, H))
    p["ba"] = nrm(ks[1], (1, H))
    p["ln_g"] = jnp.ones((1, H), jnp.float32)       # LayerNorm default init
    p["ln_b"] = jnp.zeros((1, H), jnp.float32)
    # MultiheadAttention (V slice of in_proj + out_proj)
    p["wv"] = nrm(ks[2], (H, H))
    p["bv"] = nrm(ks[3], (1, H))
    p["wo"] = nrm(ks[4], (H, H))
    p["bo"] = nrm(ks[5], (1, H))
    # LSTM (forward / reverse): W_ih stored as (H, 4H); b = b_ih + b_hh
    p["wih_f"] = nrm(ks[6], (H, 4 * H))
    p["b_f"] = nrm(ks[7], (1, 4 * H)) + nrm(ks[8], (1, 4 * H))
    p["wih_r"] = nrm(ks[9], (H, 4 * H))
    p["b_r"] = nrm(ks[10], (1, 4 * H)) + nrm(ks[11], (1, 4 * H))
    # net
    p["w1"] = nrm(ks[12], (input_size + 2 * H, H))
    p["b1"] = jnp.zeros((1, H), jnp.float32)
    p["g1"] = jnp.ones((1, H), jnp.float32)         # BatchNorm default init
    p["be1"] = jnp.zeros((1, H), jnp.float32)
    p["w2"] = nrm(ks[13], (H, H))
    p["b2"] = jnp.zeros((1, H), jnp.float32)
    p["g2"] = jnp.ones((1, H), jnp.float32)
    p["be2"] = jnp.zeros((1, H), jnp.float32)
    p["w3"] = nrm(ks[14], (H, num_classes))
    p["b3"] = jnp.zeros((1, num_classes), jnp.float32)
    # lm_head (input dim 2H, see TODO in kernel)
    p["wlm"] = nrm(ks[15], (2 * H, vocab))
    p["blm"] = jnp.zeros((1, vocab), jnp.float32)
    return p


if __name__ == "__main__":
    B, S = 8, 8
    input_size, hidden, d_t = 16, 32, 64
    num_classes, vocab = 8, 128

    key = jax.random.PRNGKey(0)
    k_emb, k_ids, k_x, k_p = jax.random.split(key, 4)

    # deterministic embedding table stands in for the pretrained transformer
    emb_table = 0.05 * jax.random.normal(k_emb, (vocab, d_t), jnp.float32)
    input_ids = jax.random.randint(k_ids, (B, S), 0, vocab)
    hidden_states = emb_table[input_ids]           # (B, S, d_t)

    x = jax.random.normal(k_x, (B, input_size), jnp.float32)
    params = init_params(k_p, input_size, hidden, d_t, num_classes, vocab)

    forward = jax.jit(enhanced_forward)
    logits, lm_out = forward(x, hidden_states, params)
    jax.block_until_ready((logits, lm_out))

    assert logits.shape == (B, num_classes)
    assert lm_out.shape == (B, vocab)
    assert bool(jnp.all(jnp.isfinite(logits))) and bool(jnp.all(jnp.isfinite(lm_out)))
    print("KERNEL_OK")
</pallas_src>

<mosaic_0001>
module attributes {stable_mosaic.version = 11 : i64} {
  func.func @fused_forward_kernel(%arg0: memref<8x8x64xf32, #tpu.memory_space<vmem>>, %arg1: memref<8x16xf32, #tpu.memory_space<vmem>>, %arg2: memref<64x32xf32, #tpu.memory_space<vmem>>, %arg3: memref<1x32xf32, #tpu.memory_space<vmem>>, %arg4: memref<1x32xf32, #tpu.memory_space<vmem>>, %arg5: memref<1x32xf32, #tpu.memory_space<vmem>>, %arg6: memref<32x256xf32, #tpu.memory_space<vmem>>, %arg7: memref<1x256xf32, #tpu.memory_space<vmem>>, %arg8: memref<16x32xf32, #tpu.memory_space<vmem>>, %arg9: memref<32x32xf32, #tpu.memory_space<vmem>>, %arg10: memref<32x32xf32, #tpu.memory_space<vmem>>, %arg11: memref<1x32xf32, #tpu.memory_space<vmem>>, %arg12: memref<1x32xf32, #tpu.memory_space<vmem>>, %arg13: memref<1x32xf32, #tpu.memory_space<vmem>>, %arg14: memref<32x32xf32, #tpu.memory_space<vmem>>, %arg15: memref<1x32xf32, #tpu.memory_space<vmem>>, %arg16: memref<1x32xf32, #tpu.memory_space<vmem>>, %arg17: memref<1x32xf32, #tpu.memory_space<vmem>>, %arg18: memref<32x128xf32, #tpu.memory_space<vmem>>, %arg19: memref<1x128xf32, #tpu.memory_space<vmem>>, %arg20: memref<32x128xf32, #tpu.memory_space<vmem>>, %arg21: memref<32x128xf32, #tpu.memory_space<vmem>>, %arg22: memref<1x128xf32, #tpu.memory_space<vmem>>, %arg23: memref<8x128xf32, #tpu.memory_space<vmem>>, %arg24: memref<8x128xf32, #tpu.memory_space<vmem>>) attributes {dimension_semantics = [], scalar_prefetch = 0 : i64, scratch_operands = 0 : i64, tpu.core_type = #tpu.core_type<tc>} {
    %c0 = arith.constant 0 : index
    %c0_0 = arith.constant 0 : index
    %c0_1 = arith.constant 0 : index
    %0 = vector.load %arg0[%c0, %c0_0, %c0_1] : memref<8x8x64xf32, #tpu.memory_space<vmem>>, vector<8x8x64xf32>
    %cst = arith.constant dense<0.000000e+00> : vector<8x64xf32>
    %1 = vector.multi_reduction <add>, %0, %cst [1] : vector<8x8x64xf32> to vector<8x64xf32>
    %c0_2 = arith.constant 0 : index
    %c0_3 = arith.constant 0 : index
    %2 = vector.load %arg2[%c0_2, %c0_3] : memref<64x32xf32, #tpu.memory_space<vmem>>, vector<64x32xf32>
    %cst_4 = arith.constant dense<0.000000e+00> : vector<8x32xf32>
    %3 = tpu.matmul %1, %2, %cst_4 {dimension_numbers = #tpu.dot_dimension_numbers<[1], [0], [0], [1], [0, 0, 1, 1], [], []>} : vector<8x64xf32>, vector<64x32xf32>, vector<8x32xf32> -> vector<8x32xf32>
    %c0_5 = arith.constant 0 : index
    %c0_6 = arith.constant 0 : index
    %4 = vector.load %arg3[%c0_5, %c0_6] : memref<1x32xf32, #tpu.memory_space<vmem>>, vector<1x32xf32>
    %5 = vector.broadcast %4 : vector<1x32xf32> to vector<8x32xf32>
    %6 = arith.addf %3, %5 : vector<8x32xf32>
    %cst_7 = arith.constant 5.000000e-01 : f32
    %7 = vector.broadcast %cst_7 : f32 to vector<8x32xf32>
    %8 = arith.mulf %7, %6 : vector<8x32xf32>
    %cst_8 = arith.constant 0.707106769 : f32
    %9 = vector.broadcast %cst_8 : f32 to vector<8x32xf32>
    %10 = arith.mulf %6, %9 : vector<8x32xf32>
    %11 = math.erf %10 : vector<8x32xf32>
    %cst_9 = arith.constant 1.000000e+00 : f32
    %12 = vector.broadcast %cst_9 : f32 to vector<8x32xf32>
    %13 = arith.addf %12, %11 : vector<8x32xf32>
    %14 = arith.mulf %8, %13 : vector<8x32xf32>
    %cst_10 = arith.constant dense<0.000000e+00> : vector<8xf32>
    %15 = vector.multi_reduction <add>, %14, %cst_10 [1] : vector<8x32xf32> to vector<8xf32>
    %16 = vector.shape_cast %15 : vector<8xf32> to vector<8x1xf32>
    %cst_11 = arith.constant 3.200000e+01 : f32
    %17 = vector.broadcast %cst_11 : f32 to vector<8x1xf32>
    %18 = arith.divf %16, %17 : vector<8x1xf32>
    %19 = vector.broadcast %18 : vector<8x1xf32> to vector<8x32xf32>
    %20 = arith.subf %14, %19 : vector<8x32xf32>
    %21 = arith.mulf %20, %20 : vector<8x32xf32>
    %cst_12 = arith.constant dense<0.000000e+00> : vector<8xf32>
    %22 = vector.multi_reduction <add>, %21, %cst_12 [1] : vector<8x32xf32> to vector<8xf32>
    %23 = vector.shape_cast %22 : vector<8xf32> to vector<8x1xf32>
    %cst_13 = arith.constant 3.200000e+01 : f32
    %24 = vector.broadcast %cst_13 : f32 to vector<8x1xf32>
    %25 = arith.divf %23, %24 : vector<8x1xf32>
    %26 = vector.broadcast %18 : vector<8x1xf32> to vector<8x32xf32>
    %27 = arith.subf %14, %26 : vector<8x32xf32>
    %cst_14 = arith.constant 9.99999974E-6 : f32
    %28 = vector.broadcast %cst_14 : f32 to vector<8x1xf32>
    %29 = arith.addf %25, %28 : vector<8x1xf32>
    %30 = math.rsqrt %29 : vector<8x1xf32>
    %31 = vector.broadcast %30 : vector<8x1xf32> to vector<8x32xf32>
    %32 = arith.mulf %27, %31 : vector<8x32xf32>
    %c0_15 = arith.constant 0 : index
    %c0_16 = arith.constant 0 : index
    %33 = vector.load %arg4[%c0_15, %c0_16] : memref<1x32xf32, #tpu.memory_space<vmem>>, vector<1x32xf32>
    %34 = vector.broadcast %33 : vector<1x32xf32> to vector<8x32xf32>
    %35 = arith.mulf %32, %34 : vector<8x32xf32>
    %c0_17 = arith.constant 0 : index
    %c0_18 = arith.constant 0 : index
    %36 = vector.load %arg5[%c0_17, %c0_18] : memref<1x32xf32, #tpu.memory_space<vmem>>, vector<1x32xf32>
    %37 = vector.broadcast %36 : vector<1x32xf32> to vector<8x32xf32>
    %38 = arith.addf %35, %37 : vector<8x32xf32>
    %c0_19 = arith.constant 0 : index
    %c0_20 = arith.constant 0 : index
    %39 = vector.load %arg6[%c0_19, %c0_20] : memref<32x256xf32, #tpu.memory_space<vmem>>, vector<32x256xf32>
    %cst_21 = arith.constant dense<0.000000e+00> : vector<8x256xf32>
    %40 = tpu.matmul %38, %39, %cst_21 {dimension_numbers = #tpu.dot_dimension_numbers<[1], [0], [0], [1], [0, 0, 1, 1], [], []>} : vector<8x32xf32>, vector<32x256xf32>, vector<8x256xf32> -> vector<8x256xf32>
    %c0_22 = arith.constant 0 : index
    %c0_23 = arith.constant 0 : index
    %41 = vector.load %arg7[%c0_22, %c0_23] : memref<1x256xf32, #tpu.memory_space<vmem>>, vector<1x256xf32>
    %42 = vector.broadcast %41 : vector<1x256xf32> to vector<8x256xf32>
    %43 = arith.addf %40, %42 : vector<8x256xf32>
    %44 = vector.extract_strided_slice %43 {offsets = [0, 0], sizes = [8, 128], strides = [1, 1]} : vector<8x256xf32> to vector<8x128xf32>
    %45 = vector.extract_strided_slice %44 {offsets = [0, 0], sizes = [8, 32], strides = [1, 1]} : vector<8x128xf32> to vector<8x32xf32>
    %46 = arith.negf %45 : vector<8x32xf32>
    %47 = math.exp %46 : vector<8x32xf32>
    %cst_24 = arith.constant 1.000000e+00 : f32
    %48 = vector.broadcast %cst_24 : f32 to vector<8x32xf32>
    %49 = arith.addf %48, %47 : vector<8x32xf32>
    %50 = arith.divf %48, %49 : vector<8x32xf32>
    %51 = vector.extract_strided_slice %44 {offsets = [0, 64], sizes = [8, 32], strides = [1, 1]} : vector<8x128xf32> to vector<8x32xf32>
    %52 = math.tanh %51 : vector<8x32xf32>
    %53 = vector.extract_strided_slice %44 {offsets = [0, 96], sizes = [8, 32], strides = [1, 1]} : vector<8x128xf32> to vector<8x32xf32>
    %54 = arith.negf %53 : vector<8x32xf32>
    %55 = math.exp %54 : vector<8x32xf32>
    %cst_25 = arith.constant 1.000000e+00 : f32
    %56 = vector.broadcast %cst_25 : f32 to vector<8x32xf32>
    %57 = arith.addf %56, %55 : vector<8x32xf32>
    %58 = arith.divf %56, %57 : vector<8x32xf32>
    %59 = arith.mulf %50, %52 : vector<8x32xf32>
    %60 = math.tanh %59 : vector<8x32xf32>
    %61 = arith.mulf %58, %60 : vector<8x32xf32>
    %62 = vector.extract_strided_slice %43 {offsets = [0, 128], sizes = [8, 128], strides = [1, 1]} : vector<8x256xf32> to vector<8x128xf32>
    %63 = vector.extract_strided_slice %62 {offsets = [0, 0], sizes = [8, 32], strides = [1, 1]} : vector<8x128xf32> to vector<8x32xf32>
    %64 = arith.negf %63 : vector<8x32xf32>
    %65 = math.exp %64 : vector<8x32xf32>
    %cst_26 = arith.constant 1.000000e+00 : f32
    %66 = vector.broadcast %cst_26 : f32 to vector<8x32xf32>
    %67 = arith.addf %66, %65 : vector<8x32xf32>
    %68 = arith.divf %66, %67 : vector<8x32xf32>
    %69 = vector.extract_strided_slice %62 {offsets = [0, 64], sizes = [8, 32], strides = [1, 1]} : vector<8x128xf32> to vector<8x32xf32>
    %70 = math.tanh %69 : vector<8x32xf32>
    %71 = vector.extract_strided_slice %62 {offsets = [0, 96], sizes = [8, 32], strides = [1, 1]} : vector<8x128xf32> to vector<8x32xf32>
    %72 = arith.negf %71 : vector<8x32xf32>
    %73 = math.exp %72 : vector<8x32xf32>
    %cst_27 = arith.constant 1.000000e+00 : f32
    %74 = vector.broadcast %cst_27 : f32 to vector<8x32xf32>
    %75 = arith.addf %74, %73 : vector<8x32xf32>
    %76 = arith.divf %74, %75 : vector<8x32xf32>
    %77 = arith.mulf %68, %70 : vector<8x32xf32>
    %78 = math.tanh %77 : vector<8x32xf32>
    %79 = arith.mulf %76, %78 : vector<8x32xf32>
    %c0_28 = arith.constant 0 : index
    %c0_29 = arith.constant 0 : index
    %80 = vector.load %arg1[%c0_28, %c0_29] : memref<8x16xf32, #tpu.memory_space<vmem>>, vector<8x16xf32>
    %c0_30 = arith.constant 0 : index
    %c0_31 = arith.constant 0 : index
    %81 = vector.load %arg8[%c0_30, %c0_31] : memref<16x32xf32, #tpu.memory_space<vmem>>, vector<16x32xf32>
    %cst_32 = arith.constant dense<0.000000e+00> : vector<8x32xf32>
    %82 = tpu.matmul %80, %81, %cst_32 {dimension_numbers = #tpu.dot_dimension_numbers<[1], [0], [0], [1], [0, 0, 1, 1], [], []>} : vector<8x16xf32>, vector<16x32xf32>, vector<8x32xf32> -> vector<8x32xf32>
    %c0_33 = arith.constant 0 : index
    %c0_34 = arith.constant 0 : index
    %83 = vector.load %arg9[%c0_33, %c0_34] : memref<32x32xf32, #tpu.memory_space<vmem>>, vector<32x32xf32>
    %cst_35 = arith.constant dense<0.000000e+00> : vector<8x32xf32>
    %84 = tpu.matmul %61, %83, %cst_35 {dimension_numbers = #tpu.dot_dimension_numbers<[1], [0], [0], [1], [0, 0, 1, 1], [], []>} : vector<8x32xf32>, vector<32x32xf32>, vector<8x32xf32> -> vector<8x32xf32>
    %85 = arith.addf %82, %84 : vector<8x32xf32>
    %c0_36 = arith.constant 0 : index
    %c0_37 = arith.constant 0 : index
    %86 = vector.load %arg10[%c0_36, %c0_37] : memref<32x32xf32, #tpu.memory_space<vmem>>, vector<32x32xf32>
    %cst_38 = arith.constant dense<0.000000e+00> : vector<8x32xf32>
    %87 = tpu.matmul %79, %86, %cst_38 {dimension_numbers = #tpu.dot_dimension_numbers<[1], [0], [0], [1], [0, 0, 1, 1], [], []>} : vector<8x32xf32>, vector<32x32xf32>, vector<8x32xf32> -> vector<8x32xf32>
    %88 = arith.addf %85, %87 : vector<8x32xf32>
    %c0_39 = arith.constant 0 : index
    %c0_40 = arith.constant 0 : index
    %89 = vector.load %arg11[%c0_39, %c0_40] : memref<1x32xf32, #tpu.memory_space<vmem>>, vector<1x32xf32>
    %90 = vector.broadcast %89 : vector<1x32xf32> to vector<8x32xf32>
    %91 = arith.addf %88, %90 : vector<8x32xf32>
    %c0_41 = arith.constant 0 : index
    %c0_42 = arith.constant 0 : index
    %92 = vector.load %arg12[%c0_41, %c0_42] : memref<1x32xf32, #tpu.memory_space<vmem>>, vector<1x32xf32>
    %c0_43 = arith.constant 0 : index
    %c0_44 = arith.constant 0 : index
    %93 = vector.load %arg13[%c0_43, %c0_44] : memref<1x32xf32, #tpu.memory_space<vmem>>, vector<1x32xf32>
    %cst_45 = arith.constant dense<0.000000e+00> : vector<32xf32>
    %94 = vector.multi_reduction <add>, %91, %cst_45 [0] : vector<8x32xf32> to vector<32xf32>
    %95 = vector.shape_cast %94 : vector<32xf32> to vector<1x32xf32>
    %cst_46 = arith.constant 8.000000e+00 : f32
    %96 = vector.broadcast %cst_46 : f32 to vector<1x32xf32>
    %97 = arith.divf %95, %96 : vector<1x32xf32>
    %98 = vector.broadcast %97 : vector<1x32xf32> to vector<8x32xf32>
    %99 = arith.subf %91, %98 : vector<8x32xf32>
    %100 = arith.mulf %99, %99 : vector<8x32xf32>
    %cst_47 = arith.constant dense<0.000000e+00> : vector<32xf32>
    %101 = vector.multi_reduction <add>, %100, %cst_47 [0] : vector<8x32xf32> to vector<32xf32>
    %102 = vector.shape_cast %101 : vector<32xf32> to vector<1x32xf32>
    %cst_48 = arith.constant 8.000000e+00 : f32
    %103 = vector.broadcast %cst_48 : f32 to vector<1x32xf32>
    %104 = arith.divf %102, %103 : vector<1x32xf32>
    %105 = vector.broadcast %97 : vector<1x32xf32> to vector<8x32xf32>
    %106 = arith.subf %91, %105 : vector<8x32xf32>
    %cst_49 = arith.constant 9.99999974E-6 : f32
    %107 = vector.broadcast %cst_49 : f32 to vector<1x32xf32>
    %108 = arith.addf %104, %107 : vector<1x32xf32>
    %109 = math.rsqrt %108 : vector<1x32xf32>
    %110 = vector.broadcast %109 : vector<1x32xf32> to vector<8x32xf32>
    %111 = arith.mulf %106, %110 : vector<8x32xf32>
    %112 = vector.broadcast %92 : vector<1x32xf32> to vector<8x32xf32>
    %113 = arith.mulf %111, %112 : vector<8x32xf32>
    %114 = vector.broadcast %93 : vector<1x32xf32> to vector<8x32xf32>
    %115 = arith.addf %113, %114 : vector<8x32xf32>
    %cst_50 = arith.constant 5.000000e-01 : f32
    %116 = vector.broadcast %cst_50 : f32 to vector<8x32xf32>
    %117 = arith.mulf %116, %115 : vector<8x32xf32>
    %cst_51 = arith.constant 0.707106769 : f32
    %118 = vector.broadcast %cst_51 : f32 to vector<8x32xf32>
    %119 = arith.mulf %115, %118 : vector<8x32xf32>
    %120 = math.erf %119 : vector<8x32xf32>
    %cst_52 = arith.constant 1.000000e+00 : f32
    %121 = vector.broadcast %cst_52 : f32 to vector<8x32xf32>
    %122 = arith.addf %121, %120 : vector<8x32xf32>
    %123 = arith.mulf %117, %122 : vector<8x32xf32>
    %c0_53 = arith.constant 0 : index
    %c0_54 = arith.constant 0 : index
    %124 = vector.load %arg14[%c0_53, %c0_54] : memref<32x32xf32, #tpu.memory_space<vmem>>, vector<32x32xf32>
    %cst_55 = arith.constant dense<0.000000e+00> : vector<8x32xf32>
    %125 = tpu.matmul %123, %124, %cst_55 {dimension_numbers = #tpu.dot_dimension_numbers<[1], [0], [0], [1], [0, 0, 1, 1], [], []>} : vector<8x32xf32>, vector<32x32xf32>, vector<8x32xf32> -> vector<8x32xf32>
    %c0_56 = arith.constant 0 : index
    %c0_57 = arith.constant 0 : index
    %126 = vector.load %arg15[%c0_56, %c0_57] : memref<1x32xf32, #tpu.memory_space<vmem>>, vector<1x32xf32>
    %127 = vector.broadcast %126 : vector<1x32xf32> to vector<8x32xf32>
    %128 = arith.addf %125, %127 : vector<8x32xf32>
    %c0_58 = arith.constant 0 : index
    %c0_59 = arith.constant 0 : index
    %129 = vector.load %arg16[%c0_58, %c0_59] : memref<1x32xf32, #tpu.memory_space<vmem>>, vector<1x32xf32>
    %c0_60 = arith.constant 0 : index
    %c0_61 = arith.constant 0 : index
    %130 = vector.load %arg17[%c0_60, %c0_61] : memref<1x32xf32, #tpu.memory_space<vmem>>, vector<1x32xf32>
    %cst_62 = arith.constant dense<0.000000e+00> : vector<32xf32>
    %131 = vector.multi_reduction <add>, %128, %cst_62 [0] : vector<8x32xf32> to vector<32xf32>
    %132 = vector.shape_cast %131 : vector<32xf32> to vector<1x32xf32>
    %cst_63 = arith.constant 8.000000e+00 : f32
    %133 = vector.broadcast %cst_63 : f32 to vector<1x32xf32>
    %134 = arith.divf %132, %133 : vector<1x32xf32>
    %135 = vector.broadcast %134 : vector<1x32xf32> to vector<8x32xf32>
    %136 = arith.subf %128, %135 : vector<8x32xf32>
    %137 = arith.mulf %136, %136 : vector<8x32xf32>
    %cst_64 = arith.constant dense<0.000000e+00> : vector<32xf32>
    %138 = vector.multi_reduction <add>, %137, %cst_64 [0] : vector<8x32xf32> to vector<32xf32>
    %139 = vector.shape_cast %138 : vector<32xf32> to vector<1x32xf32>
    %cst_65 = arith.constant 8.000000e+00 : f32
    %140 = vector.broadcast %cst_65 : f32 to vector<1x32xf32>
    %141 = arith.divf %139, %140 : vector<1x32xf32>
    %142 = vector.broadcast %134 : vector<1x32xf32> to vector<8x32xf32>
    %143 = arith.subf %128, %142 : vector<8x32xf32>
    %cst_66 = arith.constant 9.99999974E-6 : f32
    %144 = vector.broadcast %cst_66 : f32 to vector<1x32xf32>
    %145 = arith.addf %141, %144 : vector<1x32xf32>
    %146 = math.rsqrt %145 : vector<1x32xf32>
    %147 = vector.broadcast %146 : vector<1x32xf32> to vector<8x32xf32>
    %148 = arith.mulf %143, %147 : vector<8x32xf32>
    %149 = vector.broadcast %129 : vector<1x32xf32> to vector<8x32xf32>
    %150 = arith.mulf %148, %149 : vector<8x32xf32>
    %151 = vector.broadcast %130 : vector<1x32xf32> to vector<8x32xf32>
    %152 = arith.addf %150, %151 : vector<8x32xf32>
    %cst_67 = arith.constant 5.000000e-01 : f32
    %153 = vector.broadcast %cst_67 : f32 to vector<8x32xf32>
    %154 = arith.mulf %153, %152 : vector<8x32xf32>
    %cst_68 = arith.constant 0.707106769 : f32
    %155 = vector.broadcast %cst_68 : f32 to vector<8x32xf32>
    %156 = arith.mulf %152, %155 : vector<8x32xf32>
    %157 = math.erf %156 : vector<8x32xf32>
    %cst_69 = arith.constant 1.000000e+00 : f32
    %158 = vector.broadcast %cst_69 : f32 to vector<8x32xf32>
    %159 = arith.addf %158, %157 : vector<8x32xf32>
    %160 = arith.mulf %154, %159 : vector<8x32xf32>
    %c0_70 = arith.constant 0 : index
    %c0_71 = arith.constant 0 : index
    %161 = vector.load %arg18[%c0_70, %c0_71] : memref<32x128xf32, #tpu.memory_space<vmem>>, vector<32x128xf32>
    %cst_72 = arith.constant dense<0.000000e+00> : vector<8x128xf32>
    %162 = tpu.matmul %160, %161, %cst_72 {dimension_numbers = #tpu.dot_dimension_numbers<[1], [0], [0], [1], [0, 0, 1, 1], [], []>} : vector<8x32xf32>, vector<32x128xf32>, vector<8x128xf32> -> vector<8x128xf32>
    %c0_73 = arith.constant 0 : index
    %c0_74 = arith.constant 0 : index
    %163 = vector.load %arg19[%c0_73, %c0_74] : memref<1x128xf32, #tpu.memory_space<vmem>>, vector<1x128xf32>
    %164 = vector.broadcast %163 : vector<1x128xf32> to vector<8x128xf32>
    %165 = arith.addf %162, %164 : vector<8x128xf32>
    %c0_75 = arith.constant 0 : index
    %c0_76 = arith.constant 0 : index
    %166 = vector.load %arg23[%c0_75, %c0_76] : memref<8x128xf32, #tpu.memory_space<vmem>>, vector<8x128xf32>
    tpu.vector_store %arg23[%c0_75, %c0_76], %165 {strides = array<i32>} : memref<8x128xf32, #tpu.memory_space<vmem>>, vector<8x128xf32>,
    %c0_77 = arith.constant 0 : index
    %c0_78 = arith.constant 0 : index
    %167 = vector.load %arg20[%c0_77, %c0_78] : memref<32x128xf32, #tpu.memory_space<vmem>>, vector<32x128xf32>
    %cst_79 = arith.constant dense<0.000000e+00> : vector<8x128xf32>
    %168 = tpu.matmul %61, %167, %cst_79 {dimension_numbers = #tpu.dot_dimension_numbers<[1], [0], [0], [1], [0, 0, 1, 1], [], []>} : vector<8x32xf32>, vector<32x128xf32>, vector<8x128xf32> -> vector<8x128xf32>
    %c0_80 = arith.constant 0 : index
    %c0_81 = arith.constant 0 : index
    %169 = vector.load %arg21[%c0_80, %c0_81] : memref<32x128xf32, #tpu.memory_space<vmem>>, vector<32x128xf32>
    %cst_82 = arith.constant dense<0.000000e+00> : vector<8x128xf32>
    %170 = tpu.matmul %79, %169, %cst_82 {dimension_numbers = #tpu.dot_dimension_numbers<[1], [0], [0], [1], [0, 0, 1, 1], [], []>} : vector<8x32xf32>, vector<32x128xf32>, vector<8x128xf32> -> vector<8x128xf32>
    %171 = arith.addf %168, %170 : vector<8x128xf32>
    %c0_83 = arith.constant 0 : index
    %c0_84 = arith.constant 0 : index
    %172 = vector.load %arg22[%c0_83, %c0_84] : memref<1x128xf32, #tpu.memory_space<vmem>>, vector<1x128xf32>
    %173 = vector.broadcast %172 : vector<1x128xf32> to vector<8x128xf32>
    %174 = arith.addf %171, %173 : vector<8x128xf32>
    %c0_85 = arith.constant 0 : index
    %c0_86 = arith.constant 0 : index
    %175 = vector.load %arg24[%c0_85, %c0_86] : memref<8x128xf32, #tpu.memory_space<vmem>>, vector<8x128xf32>
    tpu.vector_store %arg24[%c0_85, %c0_86], %174 {strides = array<i32>} : memref<8x128xf32, #tpu.memory_space<vmem>>, vector<8x128xf32>,
    return
  }
}

</mosaic_0001>

<bundles_post_ra>
// kernel: enhanced_forward.1
= control target key start
LH: loop header
LB: loop body
LE: loop exit
PB: predicated region body
PF: predicated region fallthrough
CT: control target
= control target key end

     0   :  { %s1292_s0 = inlined_call_operand.vmem [shape: f32[8,8,64], index: 0, kind: input, shape index: {}]   ;;  %s1293_s1 = inlined_call_operand.vmem [shape: f32[8,16], index: 1, kind: input, shape index: {}]   ;;  %s1294_s2 = inlined_call_operand.vmem [shape: f32[64,32], index: 2, kind: input, shape index: {}]   ;;  %s1295_s3 = inlined_call_operand.vmem [shape: f32[1,32], index: 3, kind: input, shape index: {}]   ;;  %s1296_s4 = inlined_call_operand.vmem [shape: f32[1,32], index: 4, kind: input, shape index: {}]   ;;  %s1297_s5 = inlined_call_operand.vmem [shape: f32[1,32], index: 5, kind: input, shape index: {}]   ;;  %s1298_s6 = inlined_call_operand.vmem [shape: f32[32,256], index: 6, kind: input, shape index: {}]   ;;  %s1299_s7 = inlined_call_operand.vmem [shape: f32[1,256], index: 7, kind: input, shape index: {}]   ;;  %s1300_s8 = inlined_call_operand.vmem [shape: f32[16,32], index: 8, kind: input, shape index: {}]   ;;  %s1301_s9 = inlined_call_operand.vmem [shape: f32[32,32], index: 9, kind: input, shape index: {}]   ;;  %s1302_s10 = inlined_call_operand.vmem [shape: f32[32,32], index: 10, kind: input, shape index: {}]   ;;  %s1303_s11 = inlined_call_operand.vmem [shape: f32[1,32], index: 11, kind: input, shape index: {}]   ;;  %s1304_s12 = inlined_call_operand.vmem [shape: f32[1,32], index: 12, kind: input, shape index: {}]   ;;  %s1305_s13 = inlined_call_operand.vmem [shape: f32[1,32], index: 13, kind: input, shape index: {}]   ;;  %s1306_s14 = inlined_call_operand.vmem [shape: f32[32,32], index: 14, kind: input, shape index: {}]   ;;  %s1307_s15 = inlined_call_operand.vmem [shape: f32[1,32], index: 15, kind: input, shape index: {}]   ;;  %s1308_s16 = inlined_call_operand.vmem [shape: f32[1,32], index: 16, kind: input, shape index: {}]   ;;  %s1309_s17 = inlined_call_operand.vmem [shape: f32[1,32], index: 17, kind: input, shape index: {}]   ;;  %s1310_s18 = inlined_call_operand.vmem [shape: f32[32,128], index: 18, kind: input, shape index: {}]   ;;  %s1311_s19 = inlined_call_operand.vmem [shape: f32[1,128], index: 19, kind: input, shape index: {}]   ;;  %s1312_s20 = inlined_call_operand.vmem [shape: f32[32,128], index: 20, kind: input, shape index: {}]   ;;  %s1313_s21 = inlined_call_operand.vmem [shape: f32[32,128], index: 21, kind: input, shape index: {}]   ;;  %s1314_s22 = inlined_call_operand.vmem [shape: f32[1,128], index: 22, kind: input, shape index: {}]   ;;  %s1315_s23 = inlined_call_operand.hbm [shape: f32[8,128], index: 23, kind: output, shape index: {0}]   ;;  %s1316_s24 = inlined_call_operand.hbm [shape: f32[8,128], index: 24, kind: output, shape index: {1}]  }
   0x1   :  { %1321 = sst [smem:[#allocation8_spill]] %s1292_s0 }
   0x2   :  { %1322 = sst [smem:[#allocation9_spill]] %s1293_s1 }
   0x3   :  { %1323 = sst [smem:[#allocation10_spill]] %s1294_s2 }
   0x4   :  { %1324 = sst [smem:[#allocation11_spill]] %s1295_s3 }
   0x5   :  { %1325 = sst [smem:[#allocation12_spill]] %s1296_s4 }
   0x6   :  { %1326 = sst [smem:[#allocation13_spill]] %s1297_s5 }
   0x7   :  { %1327 = sst [smem:[#allocation14_spill]] %s1298_s6 }
   0x8   :  { %1328 = sst [smem:[#allocation15_spill]] %s1299_s7 }
   0x9   :  { %1329 = sst [smem:[#allocation16_spill]] %s1300_s8 }
   0xa   :  { %30 = vsyncpa [#allocation3], 0  ;;  %s1330_s27 = sld [smem:[#allocation10_spill]]  ;;  %vm86_vm0 = vcmask 523264   ;;  %vm163_vm1 = vcmask 1041409   ;;  %vm165_vm2 = vcmask 1042434  }
   0xb   :  { %s1331_s25 = sld [smem:[#allocation8_spill]] }
  0x10   :  { %v150_v0 = vld [vmem:[%s1330_s27 + $0x38] sm:$0xff]  ;;  %v149_v1 = vld [vmem:[%s1330_s27 + $0x30] sm:$0xff]  ;;  %v148_v2 = vld [vmem:[%s1330_s27 + $0x28] sm:$0xff] }
  0x11   :  { %187 = vmatpush.msra.mxu0 %v150_v0  ;;  %v147_v3 = vld [vmem:[%s1330_s27 + $0x20] sm:$0xff]  ;;  %v79_v5 = vld [vmem:[%s1331_s25 + $0x8] sm:$0xff]  ;;  %v80_v6 = vld [vmem:[%s1331_s25 + $0x10] sm:$0xff] }
  0x12   :  { %v78_v4 = vld [vmem:[%s1331_s25] sm:$0xff]  ;;  %v81_v7 = vld [vmem:[%s1331_s25 + $0x18] sm:$0xff]  ;;  %v83_v10 = vld [vmem:[%s1331_s25 + $0x28] sm:$0xff]  ;;  %v94_v13 = vsel %vm86_vm0, %v79_v5, 0.0  ;;  %v101_v14 = vsel %vm86_vm0, %v80_v6, 0.0 }
  0x13   :  { %188 = vmatpush.msra.mxu0 %v149_v1  ;;  %v87_v8 = vsel %vm86_vm0, %v78_v4, 0.0  ;;  %v82_v9 = vld [vmem:[%s1331_s25 + $0x20] sm:$0xff]  ;;  %v84_v11 = vld [vmem:[%s1331_s25 + $0x30] sm:$0xff]  ;;  %v146_v15 = vld [vmem:[%s1330_s27 + $0x18] sm:$0xff]  ;;  %v95_v16 = vrot.slane %v94_v13, 4  ;;  %v102_v17 = vrot.slane %v101_v14, 4 }
  0x14   :  { %v88_v12 = vrot.slane %v87_v8, 4  ;;  %v108_v18 = vsel %vm86_vm0, %v81_v7, 0.0  ;;  %v115_v19 = vsel %vm86_vm0, %v82_v9, 0.0  ;;  %v85_v20 = vld [vmem:[%s1331_s25 + $0x38] sm:$0xff]  ;;  %v122_v24 = vsel %vm86_vm0, %v83_v10, 0.0  ;;  %v145_v25 = vld [vmem:[%s1330_s27 + $0x10] sm:$0xff] }
  0x15   :  { %189 = vmatpush.msra.mxu0 %v148_v2  ;;  %v109_v22 = vrot.slane %v108_v18, 4  ;;  %v116_v23 = vrot.slane %v115_v19, 4  ;;  %v96_v26 = vadd.f32 %v95_v16, %v94_v13  ;;  %v103_v27 = vadd.f32 %v102_v17, %v101_v14  ;;  %v144_v34 = vld [vmem:[%s1330_s27 + $0x8] sm:$0xff]  ;;  %v143_v39 = vld [vmem:[%s1330_s27] sm:$0xff] }
  0x16   :  { %v89_v21 = vadd.f32 %v88_v12, %v87_v8  ;;  %v123_v28 = vrot.slane %v122_v24, 4  ;;  %v129_v29 = vsel %vm86_vm0, %v84_v11, 0.0  ;;  %v136_v38 = vsel %vm86_vm0, %v85_v20, 0.0 }
  0x17   :  { %190 = vmatpush.msra.mxu0 %v147_v3  ;;  %v110_v31 = vadd.f32 %v109_v22, %v108_v18  ;;  %v117_v32 = vadd.f32 %v116_v23, %v115_v19  ;;  %v130_v33 = vrot.slane %v129_v29, 4  ;;  %v97_v35 = vrot.slane %v96_v26, 2 }
  0x18   :  { %v90_v30 = vrot.slane %v89_v21, 2  ;;  %v104_v36 = vrot.slane %v103_v27, 2  ;;  %v124_v37 = vadd.f32 %v123_v28, %v122_v24  ;;  %v137_v47 = vrot.slane %v136_v38, 4 }
  0x19   :  { %191 = vmatpush.msra.mxu0 %v146_v15  ;;  %v111_v41 = vrot.slane %v110_v31, 2  ;;  %v118_v42 = vrot.slane %v117_v32, 2  ;;  %v131_v43 = vadd.f32 %v130_v33, %v129_v29  ;;  %v98_v44 = vadd.f32 %v97_v35, %v96_v26 }
  0x1a   :  { %v91_v40 = vadd.f32 %v90_v30, %v89_v21  ;;  %v105_v45 = vadd.f32 %v104_v36, %v103_v27  ;;  %v125_v46 = vrot.slane %v124_v37, 2  ;;  %v138_v55 = vadd.f32 %v137_v47, %v136_v38 }
  0x1b   :  { %192 = vmatpush.msra.mxu0 %v145_v25  ;;  %v112_v49 = vadd.f32 %v111_v41, %v110_v31  ;;  %v119_v50 = vadd.f32 %v118_v42, %v117_v32  ;;  %v132_v51 = vrot.slane %v131_v43, 2  ;;  %v99_v52 = vrot.slane %v98_v44, 1 }
  0x1c   :  { %v92_v48 = vrot.slane %v91_v40, 1  ;;  %v106_v53 = vrot.slane %v105_v45, 1  ;;  %v126_v54 = vadd.f32 %v125_v46, %v124_v37 }
  0x1d   :  { %193 = vmatpush.msra.mxu0 %v144_v34 }
  0x1e   :  { %31 = vsyncpa [#allocation5], 0  ;;  %v93_v56 = vadd.f32 %v92_v48, %v91_v40  ;;  %v113_v57 = vrot.slane %v112_v49, 1  ;;  %v120_v58 = vrot.slane %v119_v50, 1  ;;  %v133_v59 = vadd.f32 %v132_v51, %v131_v43  ;;  %s1332_s0 = sld [smem:[#allocation11_spill]]  ;;  %s935_s2 = smov 64  }
  0x1f   :  { %194 = vmatpush.msra.mxu0 %v143_v39  ;;  %v100_v60 = vadd.f32 %v99_v52, %v98_v44  ;;  %v107_v61 = vadd.f32 %v106_v53, %v105_v45  ;;  %v127_v62 = vrot.slane %v126_v54, 1  ;;  %v139_v63 = vrot.slane %v138_v55, 2  ;;  %s1333_s3 = sld [smem:[#allocation14_spill]]  ;;  %s936_s27 = smov 96  }
  0x20   :  { %v114_v0 = vadd.f32 %v113_v57, %v112_v49  ;;  %v121_v1 = vadd.f32 %v120_v58, %v119_v50  ;;  %v134_v2 = vrot.slane %v133_v59, 1  ;;  %vm167_vm3 = vcmask 1043459   ;;  %s1335_s26 = sld [smem:[#allocation13_spill]]  ;;  %s803_s25 = sshll.u32 %s1316_s24, 4  ;;  %s804_s25 = int_to_ptr.hbm [resolvable:$true] %s803_s25 }
  0x21   :  { %v128_v3 = vadd.f32 %v127_v62, %v126_v54  ;;  %v140_v4 = vadd.f32 %v139_v63, %v138_v55  ;;  %v164_v5 = vsel %vm163_vm1, %v100_v60, %v93_v56  ;;  %vm169_vm4 = vcmask 1044484   ;;  %s1336_s6 = sld [smem:[#allocation15_spill]]  ;;  %s792_s7 = sshll.u32 %s1315_s23, 4  ;;  %s793_s7 = int_to_ptr.hbm [resolvable:$true] %s792_s7 }
  0x22   :  { %v135_v6 = vadd.f32 %v134_v2, %v133_v59  ;;  %v166_v7 = vsel %vm165_vm2, %v107_v61, %v164_v5  ;;  %vm171_vm5 = vcmask 1045509   ;;  %vm173_vm6 = vcmask 1046534  }
  0x23   :  { %v141_v8 = vrot.slane %v140_v4, 1  ;;  %v168_v9 = vsel %vm167_vm3, %v114_v0, %v166_v7  ;;  %vm175_vm7 = vcmask 1047559   ;;  %vm243_vm12 = vcmask 261120  }
  0x24   :  { %v170_v10 = vsel %vm169_vm4, %v121_v1, %v168_v9  ;;  %v839_v15 = vld [vmem:[%s1332_s0] ss:$0 sm:$0xff]  ;;  %v934_v58 = vmov 32.0   ;;  %s1338_s0 = sld [smem:[#allocation9_spill]] }
  0x25   :  { %v142_v11 = vadd.f32 %v141_v8, %v140_v4  ;;  %v172_v12 = vsel %vm171_vm5, %v128_v3, %v170_v10  ;;  %v290_v7 = vld [vmem:[%s1333_s3 + $0x38] sm:$0xff]  ;;  %v287_v8 = vld [vmem:[%s1333_s3 + $0x20] sm:$0xff]  ;;  %v288_v9 = vld [vmem:[%s1333_s3 + $0x28] sm:$0xff] }
  0x26   :  { %v174_v13 = vsel %vm173_vm6, %v135_v6, %v172_v12  ;;  %v289_v6 = vld [vmem:[%s1333_s3 + $0x30] sm:$0xff]  ;;  %332 = vmatpush.msra.mxu2 %v290_v7  ;;  %v283_v12 = vld [vmem:[%s1333_s3] sm:$0xff] }
  0x27   :  { %v176_v14 = vsel %vm175_vm7, %v142_v11, %v174_v13  ;;  %312 = vmatpush.msra.mxu1 %v289_v6  ;;  %v285_v10 = vld [vmem:[%s1333_s3 + $0x10] sm:$0xff]  ;;  %v286_v11 = vld [vmem:[%s1333_s3 + $0x18] sm:$0xff]  ;;  %v284_v13 = vld [vmem:[%s1333_s3 + $0x8] sm:$0xff]  ;;  %s1334_s3 = sld [smem:[#allocation12_spill]] }
  0x28   :  { %817 = vmatmul.msk.f32.vlgmr.msra.gmra.mxu0 %vm86_vm0, %v176_v14  ;;  %333 = vmatpush.msra.mxu2 %v288_v9  ;;  %v408_v6 = vld [vmem:[%s1301_s9 + $0x18] sm:$0xff]  ;;  %v407_v7 = vld [vmem:[%s1301_s9 + $0x10] sm:$0xff] }
  0x29   :  { %313 = vmatpush.msra.mxu1 %v287_v8  ;;  %426 = vmatpush.msra.mxu3 %v408_v6 }
  0x2a   :  { %334 = vmatpush.msra.mxu2 %v286_v11  ;;  %v405_v11 = vld [vmem:[%s1301_s9] sm:$0xff] }
  0x2b   :  { %314 = vmatpush.msra.mxu1 %v285_v10  ;;  %v406_v10 = vld [vmem:[%s1301_s9 + $0x8] sm:$0xff]  ;;  %427 = vmatpush.msra.mxu3 %v407_v7 }
  0x2c   :  { %335 = vmatpush.msra.mxu2 %v284_v13  ;;  %v585_v7 = vld [vmem:[%s1306_s14 + $0x8] sm:$0xff] }
  0x2d   :  { %315 = vmatpush.msra.mxu1 %v283_v12  ;;  %428 = vmatpush.msra.mxu3 %v406_v10 }
  0x2f   :  { %429 = vmatpush.msra.mxu3 %v405_v11 }
  0xa5   :  { %v196_v16 = vpop.f32.mrf.mxu0 }
  0xa6   :  { %v197_v17 = vadd.f32 %v839_v15, %v196_v16 }
  0xa8   :  { %v200_v18 = vmul.f32 0.70710677, %v197_v17  ;;  %v199_v54 = vmul.f32 0.5, %v197_v17 }
  0xaa   :  { %v201_v19 = vmul.f32 %v200_v18, %v200_v18 }
  0xac   :  { %v202_v20 = vmin.f32 %v201_v19, 16.0 }
  0xae   :  { %v203_v21 = vmul.f32 2.1237322e-06, %v202_v20  ;;  %v214_v22 = vmul.f32 3.8918573e-05, %v202_v20 }
  0xb0   :  { %v204_v23 = vadd.f32 0.00028619796, %v203_v21  ;;  %v215_v24 = vadd.f32 0.001143296, %v214_v22 }
  0xb2   :  { %v205_v25 = vmul.f32 %v204_v23, %v202_v20  ;;  %v216_v26 = vmul.f32 %v215_v24, %v202_v20  ;;  %v840_v23 = vld [vmem:[%s1334_s3] ss:$0 sm:$0xff]  ;;  %s1337_s3 = sld [smem:[#allocation16_spill]] }
  0xb4   :  { %v217_v27 = vadd.f32 0.014752088, %v216_v26  ;;  %v206_v28 = vadd.f32 0.0036580483, %v205_v25  ;;  %v841_v26 = vld [vmem:[%s1335_s26] ss:$0 sm:$0xff] }
  0xb6   :  { %v218_v29 = vmul.f32 %v217_v27, %v202_v20  ;;  %v207_v31 = vmul.f32 %v206_v28, %v202_v20 }
  0xb8   :  { %v219_v30 = vadd.f32 0.112945676, %v218_v29  ;;  %v208_v34 = vadd.f32 0.05243302, %v207_v31  ;;  %v291_v29 = vld [vmem:[%s1336_s6] sm:$0x3] }
  0xb9   :  { %v404_v8 = vld [vmem:[%s1337_s3 + $0x8] sm:$0xff]  ;;  %v403_v9 = vld [vmem:[%s1337_s3] sm:$0xff] }
  0xba   :  { %v220_v32 = vmul.f32 %v219_v30, %v202_v20  ;;  %v209_v37 = vmul.f32 %v208_v34, %v202_v20  ;;  %v293_v30 = vperm.slane %v291_v29, 0  ;;  %452 = vmatpush.msrb.mxu1 %v404_v8  ;;  %v584_v8 = vld [vmem:[%s1306_s14] sm:$0xff] }
  0xbc   :  { %v221_v33 = vadd.f32 0.4994258, %v220_v32  ;;  %v210_v38 = vadd.f32 0.18741608, %v209_v37  ;;  %453 = vmatpush.msrb.mxu1 %v403_v9 }
  0xbe   :  { %v222_v35 = vmul.f32 %v221_v33, %v202_v20  ;;  %v211_v40 = vmul.f32 %v210_v38, %v202_v20  ;;  %v294_v33 = vperm.slane %v291_v29, 1 }
  0xc0   :  { %v223_v36 = vadd.f32 1.0, %v222_v35  ;;  %v212_v44 = vadd.f32 1.1283791, %v211_v40 }
  0xc2   :  { %850 = vrcp.f32 %v223_v36  ;;  %v235_v43 = vand.u32 2147483648, %v223_v36  ;;  %v233_v46 = vand.u32 2147483647, %v223_v36  ;;  %vm229_vm9 = vweird.f32 %v223_v36 }
  0xc3   :  { %v213_v49 = vmul.f32 %v212_v44, %v200_v18  ;;  %852 = vrcp.f32 %v934_v58 }
  0xc4   :  { %v236_v48 = vor.u32 1.1754944e-38, %v235_v43  ;;  %vm234_vm11 = vcmp.eq.f32.partialorder %v233_v46, 8.507059e+37 }
  0xc8   :  { %v851_v39 = vpop.eup %850 }
  0xc9   :  { %v225_v41 = vmul.f32 %v851_v39, %v223_v36  ;;  %vm230_vm8 = vweird.f32 %v851_v39  ;;  %v853_v59 = vpop.eup %852 }
  0xca   :  { %vm231_vm10 = vmor %vm229_vm9, %vm230_vm8  ;;  %v248_v60 = vmul.f32 32.0, %v853_v59  ;;  %vm252_vm13 = vweird.f32 %v853_v59  ;;  %vm434_vm9 = vcmask 130048  }
  0xcb   :  { %v226_v42 = vsub.f32 1.0, %v225_v41 }
  0xcc   :  { %v249_v61 = vsub.f32 1.0, %v248_v60 }
  0xcd   :  { %v227_v45 = vmul.f32 %v851_v39, %v226_v42 }
  0xce   :  { %v250_v62 = vmul.f32 %v853_v59, %v249_v61 }
  0xcf   :  { %v228_v47 = vadd.f32 %v851_v39, %v227_v45 }
  0xd0   :  { %v251_v63 = vadd.f32 %v853_v59, %v250_v62 }
  0xd1   :  { %v232_v50 = vsel %vm231_vm10, %v851_v39, %v228_v47 }
  0xd2   :  { %v237_v51 = vsel %vm234_vm11, %v236_v48, %v232_v50  ;;  %v253_v0 = vsel %vm252_vm13, %v853_v59, %v251_v63 }
  0xd3   :  { %v238_v52 = vmul.f32 %v237_v51, %v213_v49 }
  0xd5   :  { %v818_v53 = vclamps-f32 %v238_v52, 1.0 }
  0xd7   :  { %v241_v55 = vadd.f32 1.0, %v818_v53 }
  0xd9   :  { %v242_v56 = vmul.f32 %v241_v55, %v199_v54 }
  0xdb   :  { %v244_v57 = vsel %vm243_vm12, %v242_v56, 0.0 }
  0xdc   :  { %245 = vadd.xlane.f32.xlu0 %v244_v57 }
 0x14f   :  { %v246_v1 = vpop.xlane.xlu0 %245 }
 0x150   :  { %v254_v2 = vmul.f32 %v253_v0, %v246_v1 }
 0x152   :  { %v255_v3 = vsub.f32 %v242_v56, %v254_v2 }
 0x154   :  { %v256_v4 = vmul.f32 %v255_v3, %v255_v3 }
 0x156   :  { %v257_v5 = vsel %vm243_vm12, %v256_v4, 0.0 }
 0x157   :  { %258 = vadd.xlane.f32.xlu0 %v257_v5 }
 0x1ca   :  { %v259_v14 = vpop.xlane.xlu0 %258 }
 0x1cb   :  { %v260_v15 = vmul.f32 %v259_v14, %v253_v0 }
 0x1cd   :  { %v261_v16 = vadd.f32 1e-05, %v260_v15 }
 0x1cf   :  { %854 = vrsqrt.f32 %v261_v16  ;;  %vm268_vm15 = vweird.f32 %v261_v16 }
 0x1d5   :  { %v855_v17 = vpop.eup %854 }
 0x1d6   :  { %v263_v18 = vmul.f32 %v855_v17, %v261_v16  ;;  %vm269_vm14 = vweird.f32 %v855_v17  ;;  %v402_v16 = vld [vmem:[%s1338_s0] sm:$0xff] }
 0x1d7   :  { %vm270_vm0 = vmor %vm268_vm15, %vm269_vm14 }
 0x1d8   :  { %v264_v19 = vmul.f32 %v855_v17, %v263_v18  ;;  %v738_v18 = vld [vmem:[%s1313_s21 + $0x18] sm:$0xff] }
 0x1da   :  { %v265_v20 = vmul.f32 0.5, %v264_v19  ;;  %v460_v19 = vld [vmem:[%s1302_s10 + $0x10] sm:$0xff] }
 0x1dc   :  { %v266_v21 = vsub.f32 1.5, %v265_v20  ;;  %v737_v20 = vld [vmem:[%s1313_s21 + $0x10] sm:$0xff] }
 0x1de   :  { %v267_v22 = vmul.f32 %v855_v17, %v266_v21  ;;  %v459_v21 = vld [vmem:[%s1302_s10 + $0x8] sm:$0xff] }
 0x1e0   :  { %v271_v24 = vsel %vm270_vm0, %v855_v17, %v267_v22  ;;  %v461_v17 = vld [vmem:[%s1302_s10 + $0x18] sm:$0xff]  ;;  %v736_v22 = vld [vmem:[%s1313_s21 + $0x8] sm:$0xff] }
 0x1e1   :  { %v272_v25 = vmul.f32 %v271_v24, %v255_v3  ;;  %479 = vmatpush.msrb.mxu2 %v461_v17  ;;  %v735_v24 = vld [vmem:[%s1313_s21] sm:$0xff] }
 0x1e3   :  { %v277_v27 = vmul.f32 %v840_v23, %v272_v25  ;;  %480 = vmatpush.msrb.mxu2 %v460_v19  ;;  %v458_v23 = vld [vmem:[%s1302_s10] sm:$0xff]  ;;  %v734_v25 = vld [vmem:[%s1312_s20 + $0x18] sm:$0xff] }
 0x1e5   :  { %v282_v28 = vadd.f32 %v841_v26, %v277_v27  ;;  %481 = vmatpush.msrb.mxu2 %v459_v21  ;;  %v733_v26 = vld [vmem:[%s1312_s20 + $0x10] sm:$0xff]  ;;  %v732_v27 = vld [vmem:[%s1312_s20 + $0x8] sm:$0xff] }
 0x1e7   :  { %819 = vmatmul.msk.f32.vlgmr.msra.gmra.mxu1 %vm243_vm12, %v282_v28  ;;  %820 = vmatmul.msk.f32.vlgmr.msra.gmra.mxu2 %vm243_vm12, %v282_v28  ;;  %v731_v28 = vld [vmem:[%s1312_s20] sm:$0xff] }
 0x1e8   :  { %751 = vmatpush.msra.mxu1 %v738_v18  ;;  %482 = vmatpush.msrb.mxu2 %v458_v23  ;;  %v844_v18 = vld [vmem:[%s1305_s13] ss:$0 sm:$0xff] }
 0x1ea   :  { %752 = vmatpush.msra.mxu1 %v737_v20  ;;  %771 = vmatpush.msra.mxu2 %v734_v25 }
 0x1ec   :  { %753 = vmatpush.msra.mxu1 %v736_v22  ;;  %772 = vmatpush.msra.mxu2 %v733_v26 }
 0x1ee   :  { %754 = vmatpush.msra.mxu1 %v735_v24  ;;  %773 = vmatpush.msra.mxu2 %v732_v27 }
 0x1ef   :  { %824 = vmatmul.msk.f32.vlgmr.msrb.gmra.mxu1 %vm434_vm9, %v402_v16 }
 0x1f0   :  { %774 = vmatpush.msra.mxu2 %v731_v28 }
 0x264   :  { %v317_v31 = vpop.f32.mrf.mxu1 }
 0x265   :  { %v318_v32 = vadd.f32 %v317_v31, %v293_v30  ;;  %v938_v31 = vmov 8.0  }
 0x267   :  { %856 = vtanh.f32 %v318_v32  ;;  %v821_v38 = vmul.f32 -1.442695, %v318_v32 }
 0x26a   :  { %v337_v34 = vpop.f32.mrf.mxu2 }
 0x26b   :  { %v338_v35 = vadd.f32 %v337_v34, %v294_v33 }
 0x26c   :  { %v455_v34 = vpop.f32.mrf.mxu1 }
 0x26d   :  { %v857_v36 = vpop.eup %856  ;;  %858 = vtanh.f32 %v338_v35  ;;  %v822_v39 = vmul.f32 -1.442695, %v338_v35 }
 0x26e   :  { %361 = vrot.lane.b32.xlu1 %v857_v36, %s935_s2  ;;  %860 = vpow2.f32 %v821_v38  ;;  %v842_v36 = vld [vmem:[%s1303_s11] ss:$0 sm:$0xff] }
 0x26f   :  { %862 = vpow2.f32 %v822_v39 }
 0x273   :  { %v859_v37 = vpop.eup %858 }
 0x274   :  { %v861_v40 = vpop.eup %860 }
 0x275   :  { %v343_v41 = vadd.f32 1.0, %v861_v40  ;;  %v863_v42 = vpop.eup %862 }
 0x276   :  { %392 = vrot.lane.b32.xlu1 %v859_v37, %s935_s2  ;;  %v374_v43 = vadd.f32 1.0, %v863_v42  ;;  %s937_s2 = smov 32  }
 0x277   :  { %864 = vrcp.f32 %v343_v41  ;;  %v355_v52 = vand.u32 2147483648, %v343_v41  ;;  %vm349_vm2 = vweird.f32 %v343_v41  ;;  %v353_v53 = vand.u32 2147483647, %v343_v41 }
 0x278   :  { %866 = vrcp.f32 %v374_v43  ;;  %v386_v61 = vand.u32 2147483648, %v374_v43  ;;  %vm380_vm6 = vweird.f32 %v374_v43  ;;  %v384_v62 = vand.u32 2147483647, %v374_v43 }
 0x279   :  { %v356_v56 = vor.u32 1.1754944e-38, %v355_v52  ;;  %vm354_vm4 = vcmp.eq.f32.partialorder %v353_v53, 8.507059e+37 }
 0x27a   :  { %v387_v0 = vor.u32 1.1754944e-38, %v386_v61  ;;  %vm385_vm8 = vcmp.eq.f32.partialorder %v384_v62, 8.507059e+37 }
 0x27d   :  { %v865_v44 = vpop.eup %864 }
 0x27e   :  { %v345_v45 = vmul.f32 %v865_v44, %v343_v41  ;;  %v867_v47 = vpop.eup %866  ;;  %vm350_vm1 = vweird.f32 %v865_v44 }
 0x27f   :  { %v376_v49 = vmul.f32 %v867_v47, %v374_v43  ;;  %vm351_vm3 = vmor %vm349_vm2, %vm350_vm1  ;;  %vm381_vm5 = vweird.f32 %v867_v47 }
 0x280   :  { %v346_v46 = vsub.f32 1.0, %v345_v45  ;;  %vm382_vm7 = vmor %vm380_vm6, %vm381_vm5  ;;  %v845_v45 = vld [vmem:[%s1314_s22] ss:$0 sm:$0xff] }
 0x281   :  { %v377_v51 = vsub.f32 1.0, %v376_v49 }
 0x282   :  { %v347_v48 = vmul.f32 %v865_v44, %v346_v46 }
 0x283   :  { %v378_v55 = vmul.f32 %v867_v47, %v377_v51 }
 0x284   :  { %v348_v50 = vadd.f32 %v865_v44, %v347_v48 }
 0x285   :  { %v379_v60 = vadd.f32 %v867_v47, %v378_v55 }
 0x286   :  { %v352_v54 = vsel %vm351_vm3, %v865_v44, %v348_v50 }
 0x287   :  { %v357_v58 = vsel %vm354_vm4, %v356_v56, %v352_v54  ;;  %v383_v63 = vsel %vm382_vm7, %v867_v47, %v379_v60 }
 0x288   :  { %v388_v1 = vsel %vm385_vm8, %v387_v0, %v383_v63 }
 0x2e0   :  { %v362_v57 = vpop.permute.xlu1 %361 }
 0x2e1   :  { %v364_v59 = vmul.f32 %v362_v57, %v357_v58 }
 0x2e3   :  { %868 = vtanh.f32 %v364_v59 }
 0x2e8   :  { %v393_v2 = vpop.permute.xlu1 %392 }
 0x2e9   :  { %v869_v3 = vpop.eup %868  ;;  %v395_v4 = vmul.f32 %v393_v2, %v388_v1 }
 0x2ea   :  { %367 = vrot.lane.b32.xlu2 %v869_v3, %s936_s27 }
 0x2eb   :  { %870 = vtanh.f32 %v395_v4  ;;  %v587_v4 = vld [vmem:[%s1306_s14 + $0x18] sm:$0xff] }
 0x2ec   :  { %872 = vrcp.f32 %v938_v31  ;;  %607 = vmatpush.msrb.mxu3 %v587_v4 }
 0x2f1   :  { %v871_v5 = vpop.eup %870 }
 0x2f2   :  { %398 = vrot.lane.b32.xlu2 %v871_v5, %s936_s27  ;;  %v873_v32 = vpop.eup %872  ;;  %v586_v5 = vld [vmem:[%s1306_s14 + $0x10] sm:$0xff] }
 0x2f3   :  { %v503_v37 = vmul.f32 8.0, %v873_v32  ;;  %vm507_vm10 = vweird.f32 %v873_v32  ;;  %608 = vmatpush.msrb.mxu3 %v586_v5 }
 0x2f5   :  { %v504_v41 = vsub.f32 1.0, %v503_v37  ;;  %609 = vmatpush.msrb.mxu3 %v585_v7 }
 0x2f7   :  { %v505_v44 = vmul.f32 %v873_v32, %v504_v41  ;;  %610 = vmatpush.msrb.mxu3 %v584_v8 }
 0x2f9   :  { %v506_v51 = vadd.f32 %v873_v32, %v505_v44 }
 0x2fb   :  { %v1233_v55 = vsel %vm507_vm10, %v873_v32, %v506_v51 }
 0x344   :  { %v368_v12 = vpop.permute.xlu2 %367 }
 0x345   :  { %v370_v13 = vmul.f32 %v368_v12, %v357_v58 }
 0x347   :  { %410 = vrot.lane.b32.xlu0 %v370_v13, %s937_s2 }
 0x34c   :  { %v399_v14 = vpop.permute.xlu2 %398 }
 0x34d   :  { %v401_v15 = vmul.f32 %v399_v14, %v388_v1 }
 0x34f   :  { %463 = vrot.lane.b32.xlu1 %v401_v15, %s937_s2  ;;  %v843_v15 = vld [vmem:[%s1304_s12] ss:$0 sm:$0xff]  ;;  %s940_s2 = smov [#allocation2]  }
 0x350   :  { %s790_s27 = sshll.u32 %s940_s2, 4  ;;  %s791_s27 = int_to_ptr.vmem [resolvable:$true] %s790_s27 }
 0x3b9   :  { %v411_v29 = vpop.permute.xlu0 %410 }
 0x3ba   :  { %823 = vmatmul.msk.f32.vlgmr.msra.gmra.mxu3 %vm243_vm12, %v411_v29 }
 0x3c1   :  { %v464_v30 = vpop.permute.xlu1 %463 }
 0x3c2   :  { %825 = vmatmul.msk.f32.vlgmr.msrb.gmra.mxu2 %vm243_vm12, %v464_v30  ;;  %830 = vmatmul.msk.f32.vlgmr.msra.gmra.mxu1 %vm243_vm12, %v464_v30 }
 0x3ca   :  { %831 = vmatmul.msk.f32.vlgmr.msra.gmra.mxu2 %vm243_vm12, %v411_v29 }
 0x43d   :  { %v431_v33 = vpop.f32.mrf.mxu3 }
 0x43e   :  { %v456_v35 = vadd.f32 %v455_v34, %v431_v33 }
 0x43f   :  { %v756_v46 = vpop.f32.mrf.mxu1 }
 0x445   :  { %v484_v38 = vpop.f32.mrf.mxu2 }
 0x446   :  { %v487_v39 = vadd.f32 %v484_v38, %v456_v35 }
 0x448   :  { %v492_v40 = vadd.f32 %v842_v36, %v487_v39 }
 0x44a   :  { %v495_v42 = vsel %vm243_vm12, %v492_v40, 0.0 }
 0x44b   :  { %v496_v43 = vrot.slane %v495_v42, 4 }
 0x44d   :  { %v497_v47 = vadd.f32 %v496_v43, %v495_v42  ;;  %v776_v48 = vpop.f32.mrf.mxu2 }
 0x44e   :  { %v777_v49 = vadd.f32 %v776_v48, %v756_v46 }
 0x44f   :  { %v498_v50 = vrot.slane %v497_v47, 2 }
 0x450   :  { %v783_v52 = vadd.f32 %v845_v45, %v777_v49 }
 0x451   :  { %v499_v53 = vadd.f32 %v498_v50, %v497_v47 }
 0x452   :  { %784 = vst [vmem:[#allocation4] sm:$0xff] %v783_v52 }
 0x453   :  { %v500_v54 = vrot.slane %v499_v53, 1 }
 0x455   :  { %v501_v56 = vadd.f32 %v500_v54, %v499_v53 }
 0x457   :  { %v509_v57 = vmul.f32 %v1233_v55, %v501_v56 }
 0x459   :  { %v510_v58 = vsub.f32 %v492_v40, %v509_v57 }
 0x45b   :  { %v511_v59 = vmul.f32 %v510_v58, %v510_v58 }
 0x45d   :  { %v512_v60 = vsel %vm243_vm12, %v511_v59, 0.0 }
 0x45e   :  { %v513_v61 = vrot.slane %v512_v60, 4 }
 0x460   :  { %v514_v62 = vadd.f32 %v513_v61, %v512_v60  ;;  %v846_v61 = vld [vmem:[%s1307_s15] ss:$0 sm:$0xff] }
 0x462   :  { %v515_v63 = vrot.slane %v514_v62, 2 }
 0x464   :  { %v516_v0 = vadd.f32 %v515_v63, %v514_v62 }
 0x466   :  { %v517_v1 = vrot.slane %v516_v0, 1 }
 0x468   :  { %v518_v2 = vadd.f32 %v517_v1, %v516_v0 }
 0x46a   :  { %v519_v3 = vmul.f32 %v518_v2, %v1233_v55 }
 0x46c   :  { %v520_v6 = vadd.f32 1e-05, %v519_v3 }
 0x46e   :  { %874 = vrsqrt.f32 %v520_v6  ;;  %vm527_vm13 = vweird.f32 %v520_v6 }
 0x474   :  { %v875_v9 = vpop.eup %874 }
 0x475   :  { %v522_v10 = vmul.f32 %v875_v9, %v520_v6  ;;  %vm528_vm11 = vweird.f32 %v875_v9 }
 0x476   :  { %vm529_vm14 = vmor %vm527_vm13, %vm528_vm11 }
 0x477   :  { %v523_v11 = vmul.f32 %v875_v9, %v522_v10 }
 0x479   :  { %v524_v12 = vmul.f32 0.5, %v523_v11 }
 0x47b   :  { %v525_v13 = vsub.f32 1.5, %v524_v12 }
 0x47d   :  { %v526_v14 = vmul.f32 %v875_v9, %v525_v13 }
 0x47f   :  { %v530_v16 = vsel %vm529_vm14, %v875_v9, %v526_v14 }
 0x480   :  { %v531_v17 = vmul.f32 %v530_v16, %v510_v58 }
 0x482   :  { %v535_v19 = vmul.f32 %v843_v15, %v531_v17 }
 0x484   :  { %v539_v20 = vadd.f32 %v844_v18, %v535_v19  ;;  %v702_v18 = vld [vmem:[%s1310_s18 + $0x18] sm:$0xff]  ;;  %v701_v19 = vld [vmem:[%s1310_s18 + $0x10] sm:$0xff] }
 0x485   :  { %722 = vmatpush.msrb.mxu0 %v702_v18 }
 0x486   :  { %v541_v21 = vmul.f32 0.70710677, %v539_v20  ;;  %v540_v58 = vmul.f32 0.5, %v539_v20 }
 0x487   :  { %723 = vmatpush.msrb.mxu0 %v701_v19 }
 0x488   :  { %v542_v22 = vmul.f32 %v541_v21, %v541_v21 }
 0x48a   :  { %v543_v23 = vmin.f32 %v542_v22, 16.0 }
 0x48c   :  { %v544_v24 = vmul.f32 2.1237322e-06, %v543_v23  ;;  %v555_v25 = vmul.f32 3.8918573e-05, %v543_v23 }
 0x48e   :  { %v545_v26 = vadd.f32 0.00028619796, %v544_v24  ;;  %v556_v27 = vadd.f32 0.001143296, %v555_v25 }
 0x490   :  { %v546_v28 = vmul.f32 %v545_v26, %v543_v23  ;;  %v557_v29 = vmul.f32 %v556_v27, %v543_v23 }
 0x492   :  { %v558_v30 = vadd.f32 0.014752088, %v557_v29  ;;  %v547_v31 = vadd.f32 0.0036580483, %v546_v28  ;;  %v847_v28 = vld [vmem:[%s1308_s16] ss:$0 sm:$0xff] }
 0x493   :  { %s939_s16 = smov [#allocation4]  }
 0x494   :  { %v559_v32 = vmul.f32 %v558_v30, %v543_v23  ;;  %v548_v34 = vmul.f32 %v547_v31, %v543_v23  ;;  %v848_v31 = vld [vmem:[%s1309_s17] ss:$0 sm:$0xff]  ;;  %s801_s17 = sshll.u32 %s939_s16, 4  ;;  %s802_s17 = int_to_ptr.vmem [resolvable:$true] %s801_s17 }
 0x495   :  { %806 = dma.vmem_to_hbm [thread:$0]  %s802_s17, 128, %s804_s25, [#allocation5]  }
 0x496   :  { %v560_v33 = vadd.f32 0.112945676, %v559_v32  ;;  %v549_v37 = vadd.f32 0.05243302, %v548_v34 }
 0x498   :  { %v561_v35 = vmul.f32 %v560_v33, %v543_v23  ;;  %v550_v40 = vmul.f32 %v549_v37, %v543_v23 }
 0x49a   :  { %v562_v36 = vadd.f32 0.4994258, %v561_v35  ;;  %v551_v41 = vadd.f32 0.18741608, %v550_v40 }
 0x49c   :  { %v563_v38 = vmul.f32 %v562_v36, %v543_v23  ;;  %v552_v43 = vmul.f32 %v551_v41, %v543_v23 }
 0x49e   :  { %v564_v39 = vadd.f32 1.0, %v563_v38  ;;  %v553_v47 = vadd.f32 1.1283791, %v552_v43 }
 0x4a0   :  { %876 = vrcp.f32 %v564_v39  ;;  %v576_v46 = vand.u32 2147483648, %v564_v39  ;;  %v574_v49 = vand.u32 2147483647, %v564_v39  ;;  %vm570_vm0 = vweird.f32 %v564_v39 }
 0x4a1   :  { %v554_v52 = vmul.f32 %v553_v47, %v541_v21  ;;  %v700_v21 = vld [vmem:[%s1310_s18 + $0x8] sm:$0xff] }
 0x4a2   :  { %v577_v51 = vor.u32 1.1754944e-38, %v576_v46  ;;  %vm575_vm2 = vcmp.eq.f32.partialorder %v574_v49, 8.507059e+37  ;;  %724 = vmatpush.msrb.mxu0 %v700_v21 }
 0x4a6   :  { %v877_v42 = vpop.eup %876 }
 0x4a7   :  { %v566_v44 = vmul.f32 %v877_v42, %v564_v39  ;;  %vm571_vm15 = vweird.f32 %v877_v42 }
 0x4a8   :  { %vm572_vm1 = vmor %vm570_vm0, %vm571_vm15 }
 0x4a9   :  { %v567_v45 = vsub.f32 1.0, %v566_v44 }
 0x4ab   :  { %v568_v48 = vmul.f32 %v877_v42, %v567_v45 }
 0x4ad   :  { %v569_v50 = vadd.f32 %v877_v42, %v568_v48 }
 0x4af   :  { %v573_v53 = vsel %vm572_vm1, %v877_v42, %v569_v50 }
 0x4b0   :  { %v578_v54 = vsel %vm575_vm2, %v577_v51, %v573_v53 }
 0x4b1   :  { %v579_v56 = vmul.f32 %v578_v54, %v554_v52 }
 0x4b3   :  { %v826_v57 = vclamps-f32 %v579_v56, 1.0 }
 0x4b5   :  { %v582_v59 = vadd.f32 1.0, %v826_v57 }
 0x4b7   :  { %v583_v60 = vmul.f32 %v582_v59, %v540_v58 }
 0x4b9   :  { %827 = vmatmul.msk.f32.vlgmr.msrb.gmra.mxu3 %vm243_vm12, %v583_v60 }
 0x53c   :  { %v612_v62 = vpop.f32.mrf.mxu3 }
 0x53d   :  { %v613_v63 = vadd.f32 %v846_v61, %v612_v62 }
 0x53f   :  { %v617_v0 = vsel %vm243_vm12, %v613_v63, 0.0 }
 0x540   :  { %v618_v1 = vrot.slane %v617_v0, 4 }
 0x542   :  { %v619_v2 = vadd.f32 %v618_v1, %v617_v0 }
 0x544   :  { %v620_v3 = vrot.slane %v619_v2, 2 }
 0x546   :  { %v621_v4 = vadd.f32 %v620_v3, %v619_v2 }
 0x548   :  { %v622_v5 = vrot.slane %v621_v4, 1 }
 0x54a   :  { %v623_v6 = vadd.f32 %v622_v5, %v621_v4 }
 0x54c   :  { %v624_v7 = vmul.f32 %v623_v6, %v1233_v55 }
 0x54e   :  { %v625_v8 = vsub.f32 %v613_v63, %v624_v7 }
 0x550   :  { %v626_v9 = vmul.f32 %v625_v8, %v625_v8 }
 0x552   :  { %v627_v10 = vsel %vm243_vm12, %v626_v9, 0.0 }
 0x553   :  { %v628_v11 = vrot.slane %v627_v10, 4 }
 0x555   :  { %v629_v12 = vadd.f32 %v628_v11, %v627_v10  ;;  %v849_v10 = vld [vmem:[%s1311_s19] ss:$0 sm:$0xff] }
 0x557   :  { %v630_v13 = vrot.slane %v629_v12, 2 }
 0x559   :  { %v631_v14 = vadd.f32 %v630_v13, %v629_v12 }
 0x55b   :  { %v632_v15 = vrot.slane %v631_v14, 1 }
 0x55d   :  { %v633_v16 = vadd.f32 %v632_v15, %v631_v14 }
 0x55f   :  { %v634_v17 = vmul.f32 %v633_v16, %v1233_v55  ;;  %v699_v55 = vld [vmem:[%s1310_s18] sm:$0xff] }
 0x560   :  { %725 = vmatpush.msrb.mxu0 %v699_v55 }
 0x561   :  { %v635_v20 = vadd.f32 1e-05, %v634_v17 }
 0x563   :  { %878 = vrsqrt.f32 %v635_v20  ;;  %vm642_vm4 = vweird.f32 %v635_v20 }
 0x569   :  { %v879_v22 = vpop.eup %878 }
 0x56a   :  { %v637_v23 = vmul.f32 %v879_v22, %v635_v20  ;;  %vm643_vm3 = vweird.f32 %v879_v22 }
 0x56b   :  { %vm644_vm5 = vmor %vm642_vm4, %vm643_vm3 }
 0x56c   :  { %v638_v24 = vmul.f32 %v879_v22, %v637_v23 }
 0x56e   :  { %v639_v25 = vmul.f32 0.5, %v638_v24 }
 0x570   :  { %v640_v26 = vsub.f32 1.5, %v639_v25 }
 0x572   :  { %v641_v27 = vmul.f32 %v879_v22, %v640_v26 }
 0x574   :  { %v645_v29 = vsel %vm644_vm5, %v879_v22, %v641_v27 }
 0x575   :  { %v646_v30 = vmul.f32 %v645_v29, %v625_v8 }
 0x577   :  { %v650_v32 = vmul.f32 %v847_v28, %v646_v30 }
 0x579   :  { %v654_v33 = vadd.f32 %v848_v31, %v650_v32 }
 0x57b   :  { %v656_v34 = vmul.f32 0.70710677, %v654_v33  ;;  %v655_v7 = vmul.f32 0.5, %v654_v33 }
 0x57d   :  { %v657_v35 = vmul.f32 %v656_v34, %v656_v34 }
 0x57f   :  { %v658_v36 = vmin.f32 %v657_v35, 16.0 }
 0x581   :  { %v659_v37 = vmul.f32 2.1237322e-06, %v658_v36  ;;  %v670_v38 = vmul.f32 3.8918573e-05, %v658_v36 }
 0x583   :  { %v660_v39 = vadd.f32 0.00028619796, %v659_v37  ;;  %v671_v40 = vadd.f32 0.001143296, %v670_v38 }
 0x585   :  { %v661_v41 = vmul.f32 %v660_v39, %v658_v36  ;;  %v672_v42 = vmul.f32 %v671_v40, %v658_v36 }
 0x587   :  { %v673_v43 = vadd.f32 0.014752088, %v672_v42  ;;  %v662_v44 = vadd.f32 0.0036580483, %v661_v41 }
 0x589   :  { %v674_v45 = vmul.f32 %v673_v43, %v658_v36  ;;  %v663_v47 = vmul.f32 %v662_v44, %v658_v36 }
 0x58b   :  { %v675_v46 = vadd.f32 0.112945676, %v674_v45  ;;  %v664_v50 = vadd.f32 0.05243302, %v663_v47 }
 0x58d   :  { %v676_v48 = vmul.f32 %v675_v46, %v658_v36  ;;  %v665_v53 = vmul.f32 %v664_v50, %v658_v36 }
 0x58f   :  { %v677_v49 = vadd.f32 0.4994258, %v676_v48  ;;  %v666_v54 = vadd.f32 0.18741608, %v665_v53 }
 0x591   :  { %v678_v51 = vmul.f32 %v677_v49, %v658_v36  ;;  %v667_v57 = vmul.f32 %v666_v54, %v658_v36 }
 0x593   :  { %v679_v52 = vadd.f32 1.0, %v678_v51  ;;  %v668_v61 = vadd.f32 1.1283791, %v667_v57 }
 0x595   :  { %880 = vrcp.f32 %v679_v52  ;;  %v691_v60 = vand.u32 2147483648, %v679_v52  ;;  %v689_v63 = vand.u32 2147483647, %v679_v52  ;;  %vm685_vm7 = vweird.f32 %v679_v52 }
 0x596   :  { %v669_v2 = vmul.f32 %v668_v61, %v656_v34 }
 0x597   :  { %v692_v1 = vor.u32 1.1754944e-38, %v691_v60  ;;  %vm690_vm9 = vcmp.eq.f32.partialorder %v689_v63, 8.507059e+37 }
 0x59b   :  { %v881_v56 = vpop.eup %880 }
 0x59c   :  { %v681_v58 = vmul.f32 %v881_v56, %v679_v52  ;;  %vm686_vm6 = vweird.f32 %v881_v56 }
 0x59d   :  { %vm687_vm8 = vmor %vm685_vm7, %vm686_vm6 }
 0x59e   :  { %v682_v59 = vsub.f32 1.0, %v681_v58 }
 0x5a0   :  { %v683_v62 = vmul.f32 %v881_v56, %v682_v59 }
 0x5a2   :  { %v684_v0 = vadd.f32 %v881_v56, %v683_v62 }
 0x5a4   :  { %v688_v3 = vsel %vm687_vm8, %v881_v56, %v684_v0 }
 0x5a5   :  { %v693_v4 = vsel %vm690_vm9, %v692_v1, %v688_v3 }
 0x5a6   :  { %v694_v5 = vmul.f32 %v693_v4, %v669_v2 }
 0x5a8   :  { %v828_v6 = vclamps-f32 %v694_v5, 1.0 }
 0x5aa   :  { %v697_v8 = vadd.f32 1.0, %v828_v6 }
 0x5ac   :  { %v698_v9 = vmul.f32 %v697_v8, %v655_v7 }
 0x5ae   :  { %829 = vmatmul.msk.f32.vlgmr.msrb.gmra.mxu0 %vm243_vm12, %v698_v9 }
 0x62b   :  { %v727_v11 = vpop.f32.mrf.mxu0 }
 0x62c   :  { %v728_v12 = vadd.f32 %v849_v10, %v727_v11 }
 0x62e   :  { %730 = vst [vmem:[#allocation2] sm:$0xff] %v728_v12 }
 0x62f   :  { %795 = dma.vmem_to_hbm [thread:$0]  %s791_s27, 128, %s793_s7, [#allocation3]  }
 0x630   :  { %930 = dma.done.wait [#allocation3], 128  }
 0x631   :  { %931 = vsyncadd [#allocation3], 4294967168 }
 0x632   :  { %932 = dma.done.wait [#allocation5], 128  }
 0x633   :  { %933 = vsyncadd [#allocation5], 4294967168 }
 0x634   :  { %815 = vsyncpa [#allocation3], 1 }
 0x635   :  { %816 = vsyncpa [#allocation5], 1 }

</bundles_post_ra>
